<compile_context>
chip_gen: v6e
topology: v6e:2x2x1
jax: 0.10.0
libtpu: 0.0.40
codegen_flags: <defaults>
</compile_context>

<pallas_src>
import math
import functools

import jax
import jax.numpy as jnp
from jax.experimental import pallas as pl
from jax.experimental.pallas import tpu as pltpu

# All grids in this model are 1-D and independent across iterations.
_PARALLEL_1D = pltpu.CompilerParams(dimension_semantics=("parallel",))


# ----------------------------------------------------------------------------
# generic matmul kernel  (bf16 MXU operands, f32 accumulate / epilogue)
# ----------------------------------------------------------------------------
@functools.lru_cache(maxsize=None)
def _mm_kernel(silu_in: bool, silu_out: bool):
    def kern(x_ref, w_ref, b_ref, o_ref):
        x = x_ref[...]                                   # f32
        if silu_in:
            x = x * jax.nn.sigmoid(x)                    # f32 elementwise
        y = jnp.dot(x.astype(jnp.bfloat16), w_ref[...],
                    preferred_element_type=jnp.float32) + b_ref[...]
        if silu_out:
            y = y * jax.nn.sigmoid(y)
        o_ref[...] = y
    return kern


def pallas_linear(x, w, b=None, silu_in=False, silu_out=False):
    """y = [silu]( [silu](x) @ w + b ) ; x:(M,K) f32, w:(K,N) bf16, b:(N,)|None."""
    x = x.astype(jnp.float32)
    M, K = x.shape
    N = w.shape[1]
    bb = jnp.zeros((1, N), jnp.float32) if b is None else b.reshape(1, N).astype(jnp.float32)
    tm = M
    if M > 512:
        for cand in (512, 256, 128, 64, 32, 16, 8):
            if M % cand == 0:
                tm = cand
                break
    return pl.pallas_call(
        _mm_kernel(bool(silu_in), bool(silu_out)),
        grid=(M // tm,),
        in_specs=[
            pl.BlockSpec((tm, K), lambda i: (i, 0)),
            pl.BlockSpec((K, N), lambda i: (0, 0)),
            pl.BlockSpec((1, N), lambda i: (0, 0)),
        ],
        out_specs=pl.BlockSpec((tm, N), lambda i: (i, 0)),
        out_shape=jax.ShapeDtypeStruct((M, N), jnp.float32),
        compiler_params=_PARALLEL_1D,
    )(x, w.astype(jnp.bfloat16), bb)


# ----------------------------------------------------------------------------
# fused GroupNorm(+SiLU) + 3x3 conv (+epilogue adds) kernel
# ----------------------------------------------------------------------------
@functools.lru_cache(maxsize=None)
def _fused_conv_kernel(H: int, W: int, do_gn: bool, do_silu: bool,
                       add_vec: bool, add_map: bool,
                       n_per_group: float, eps: float):
    HW = H * W

    def kern(*refs):
        it = iter(refs)
        x_ref = next(it)
        if do_gn:
            g_ref, bta_ref, gm_ref, gmt_ref = next(it), next(it), next(it), next(it)
        w_ref = next(it)          # (9, Cin, Cout) bf16
        b_ref = next(it)          # (1, Cout) f32
        ml_ref = next(it)         # (HW, 1)  zero where w == 0
        mr_ref = next(it)         # (HW, 1)  zero where w == W-1
        vec_ref = next(it) if add_vec else None
        map_ref = next(it) if add_map else None
        o_ref = next(it)
        s_ref = next(it)          # scratch ((H+2)*W + 2, Cin) f32

        x = x_ref[0]                                    # (HW, Cin) f32
        if do_gn:
            gm = gm_ref[...]                            # (Cin, 32) one-hot membership
            s1 = jnp.dot(jnp.sum(x, axis=0, keepdims=True), gm,
                         preferred_element_type=jnp.float32)          # (1, 32)
            s2 = jnp.dot(jnp.sum(x * x, axis=0, keepdims=True), gm,
                         preferred_element_type=jnp.float32)
            mean_g = s1 / n_per_group
            var_g = jnp.maximum(s2 / n_per_group - mean_g * mean_g, 0.0)
            inv_g = jax.lax.rsqrt(var_g + eps)
            mean_c = jnp.dot(mean_g, gmt_ref[...], preferred_element_type=jnp.float32)
            inv_c = jnp.dot(inv_g, gmt_ref[...], preferred_element_type=jnp.float32)
            y = (x - mean_c) * inv_c * g_ref[...] + bta_ref[...]
        else:
            y = x
        if do_silu:
            y = y * jax.nn.sigmoid(y)                   # f32 elementwise

        # Flat zero-padded "image":  S[1 + (h+1)*W + w] = y[h*W + w]
        zero_edge = jnp.zeros((W + 1, s_ref.shape[1]), jnp.float32)
        s_ref[0:W + 1, :] = zero_edge
        s_ref[W + 1 + HW:, :] = zero_edge
        s_ref[W + 1:W + 1 + HW, :] = y

        ml = ml_ref[...]
        mr = mr_ref[...]

        # out[i] = sum_{dy,dx} S[i + dy*W + dx] @ W_tap[dy,dx]   (masked at row ends)
        acc = None
        for dy in range(3):
            for dx in range(3):
                off = dy * W + dx
                src = s_ref[off:off + HW, :]
                if dx == 0:
                    src = src * ml
                elif dx == 2:
                    src = src * mr
                contrib = jnp.dot(src.astype(jnp.bfloat16), w_ref[dy * 3 + dx],
                                  preferred_element_type=jnp.float32)
                acc = contrib if acc is None else acc + contrib

        out = acc + b_ref[...]
        if add_vec:
            out = out + vec_ref[...]                    # (1, Cout) per-batch t-emb
        if add_map:
            out = out + map_ref[0]                      # (HW, Cout) residual
        o_ref[0] = out
    return kern


@functools.lru_cache(maxsize=None)
def _group_onehot(C: int):
    gs = C // 32
    gm = jnp.repeat(jnp.eye(32, dtype=jnp.float32), gs, axis=0)     # (C, 32)
    return gm, gm.T


@functools.lru_cache(maxsize=None)
def _edge_masks(H: int, W: int):
    wpos = jnp.arange(H * W, dtype=jnp.int32) % W
    ml = (wpos != 0).astype(jnp.float32).reshape(H * W, 1)
    mr = (wpos != W - 1).astype(jnp.float32).reshape(H * W, 1)
    return ml, mr


def fused_conv3x3(x, w9, b, *, gn=None, silu=False, add_vec=None, add_map=None):
    """3x3 'same' conv (stride 1), optionally fused with a preceding GroupNorm(32)
    (+SiLU) and with per-batch-vector / feature-map epilogue adds.  NHWC."""
    B, H, W, Cin = x.shape
    Cout = w9.shape[-1]
    HW = H * W
    do_gn = gn is not None

    inputs = [x.reshape(B, HW, Cin).astype(jnp.float32)]
    in_specs = [pl.BlockSpec((1, HW, Cin), lambda i: (i, 0, 0))]
    if do_gn:
        gm, gmt = _group_onehot(Cin)
        inputs += [gn['g'].reshape(1, Cin), gn['b'].reshape(1, Cin), gm, gmt]
        in_specs += [
            pl.BlockSpec((1, Cin), lambda i: (0, 0)),
            pl.BlockSpec((1, Cin), lambda i: (0, 0)),
            pl.BlockSpec((Cin, 32), lambda i: (0, 0)),
            pl.BlockSpec((32, Cin), lambda i: (0, 0)),
        ]
        n_per_group = float(HW * (Cin // 32))
    else:
        n_per_group = 1.0

    bias = jnp.zeros((1, Cout), jnp.float32) if b is None else b.reshape(1, Cout).astype(jnp.float32)
    ml, mr = _edge_masks(H, W)
    inputs += [w9.astype(jnp.bfloat16), bias, ml, mr]
    in_specs += [
        pl.BlockSpec((9, Cin, Cout), lambda i: (0, 0, 0)),
        pl.BlockSpec((1, Cout), lambda i: (0, 0)),
        pl.BlockSpec((HW, 1), lambda i: (0, 0)),
        pl.BlockSpec((HW, 1), lambda i: (0, 0)),
    ]
    if add_vec is not None:
        inputs.append(add_vec.astype(jnp.float32))                     # (B, Cout)
        in_specs.append(pl.BlockSpec((1, Cout), lambda i: (i, 0)))
    if add_map is not None:
        inputs.append(add_map.reshape(B, HW, Cout).astype(jnp.float32))
        in_specs.append(pl.BlockSpec((1, HW, Cout), lambda i: (i, 0, 0)))

    out = pl.pallas_call(
        _fused_conv_kernel(H, W, do_gn, bool(silu),
                           add_vec is not None, add_map is not None,
                           n_per_group, 1e-5),
        grid=(B,),
        in_specs=in_specs,
        out_specs=pl.BlockSpec((1, HW, Cout), lambda i: (i, 0, 0)),
        out_shape=jax.ShapeDtypeStruct((B, HW, Cout), jnp.float32),
        scratch_shapes=[pltpu.VMEM(((H + 2) * W + 2, Cin), jnp.float32)],
        compiler_params=_PARALLEL_1D,
    )(*inputs)
    return out.reshape(B, H, W, Cout)


# ----------------------------------------------------------------------------
# fused GroupNorm + single-head self-attention kernel (per batch element)
# ----------------------------------------------------------------------------
@functools.lru_cache(maxsize=None)
def _attn_kernel(n_per_group: float, eps: float):
    def kern(x_ref, g_ref, bta_ref, gm_ref, gmt_ref,
             wq_ref, wk_ref, wv_ref, wp_ref, o_ref):
        x = x_ref[0]                                    # (HW, C) f32
        gm = gm_ref[...]
        s1 = jnp.dot(jnp.sum(x, axis=0, keepdims=True), gm,
                     preferred_element_type=jnp.float32)
        s2 = jnp.dot(jnp.sum(x * x, axis=0, keepdims=True), gm,
                     preferred_element_type=jnp.float32)
        mean_g = s1 / n_per_group
        var_g = jnp.maximum(s2 / n_per_group - mean_g * mean_g, 0.0)
        inv_g = jax.lax.rsqrt(var_g + eps)
        mean_c = jnp.dot(mean_g, gmt_ref[...], preferred_element_type=jnp.float32)
        inv_c = jnp.dot(inv_g, gmt_ref[...], preferred_element_type=jnp.float32)
        h = ((x - mean_c) * inv_c * g_ref[...] + bta_ref[...]).astype(jnp.bfloat16)

        q = jnp.dot(h, wq_ref[...], preferred_element_type=jnp.float32)  # wq pre-scaled
        k = jnp.dot(h, wk_ref[...], preferred_element_type=jnp.float32)
        v = jnp.dot(h, wv_ref[...], preferred_element_type=jnp.float32)
        logits = jax.lax.dot_general(q.astype(jnp.bfloat16), k.astype(jnp.bfloat16),
                                     (((1,), (1,)), ((), ())),
                                     preferred_element_type=jnp.float32)
        m = jnp.max(logits, axis=-1, keepdims=True)
        p = jnp.exp(logits - m)                                           # f32
        p = p * pl.reciprocal(jnp.sum(p, axis=-1, keepdims=True), approx=True)
        a = jnp.dot(p.astype(jnp.bfloat16), v.astype(jnp.bfloat16),
                    preferred_element_type=jnp.float32)
        o_ref[0] = x + jnp.dot(a.astype(jnp.bfloat16), wp_ref[...],
                               preferred_element_type=jnp.float32)
    return kern


def apply_attn(x, p):
    B, H, W, C = x.shape
    HW = H * W
    gm, gmt = _group_onehot(C)
    out = pl.pallas_call(
        _attn_kernel(float(HW * (C // 32)), 1e-5),
        grid=(B,),
        in_specs=[pl.BlockSpec((1, HW, C), lambda i: (i, 0, 0)),
                  pl.BlockSpec((1, C), lambda i: (0, 0)),
                  pl.BlockSpec((1, C), lambda i: (0, 0)),
                  pl.BlockSpec((C, 32), lambda i: (0, 0)),
                  pl.BlockSpec((32, C), lambda i: (0, 0))]
        + [pl.BlockSpec((C, C), lambda i: (0, 0)) for _ in range(4)],
        out_specs=pl.BlockSpec((1, HW, C), lambda i: (i, 0, 0)),
        out_shape=jax.ShapeDtypeStruct((B, HW, C), jnp.float32),
        compiler_params=_PARALLEL_1D,
    )(x.reshape(B, HW, C).astype(jnp.float32),
      p['norm']['g'].reshape(1, C), p['norm']['b'].reshape(1, C), gm, gmt,
      p['wq'], p['wk'], p['wv'], p['wp'])
    return out.reshape(B, H, W, C)


# ----------------------------------------------------------------------------
# small-Cin / strided convs (im2col glue, matmul on the MXU kernel)
# ----------------------------------------------------------------------------
def conv3x3_small_cin(x, w9, b=None):
    """im2col path used only for the 1-channel stem conv (Cin=1)."""
    B, H, W, Cin = x.shape
    Cout = w9.shape[-1]
    xp = jnp.pad(x, ((0, 0), (1, 1), (1, 1), (0, 0)))
    cols = [xp[:, dy:dy + H, dx:dx + W, :] for dy in range(3) for dx in range(3)]
    patches = jnp.concatenate(cols, axis=-1).reshape(B * H * W, 9 * Cin)
    out = pallas_linear(patches, w9.reshape(9 * Cin, Cout), b)
    return out.reshape(B, H, W, Cout)


def conv3x3_stride2(x, w9, b):
    """3x3 conv, stride 2, padding 1 — patches built only at the strided output grid."""
    B, H, W, Cin = x.shape
    assert H % 2 == 0 and W % 2 == 0, "stride-2 path assumes even H, W"
    Cout = w9.shape[-1]
    Ho, Wo = H // 2, W // 2
    xp = jnp.pad(x, ((0, 0), (1, 1), (1, 1), (0, 0)))
    cols = [xp[:, dy:dy + H:2, dx:dx + W:2, :] for dy in range(3) for dx in range(3)]
    patches = jnp.concatenate(cols, axis=-1).reshape(B * Ho * Wo, 9 * Cin)
    out = pallas_linear(patches, w9.reshape(9 * Cin, Cout), b)
    return out.reshape(B, Ho, Wo, Cout)


# ----------------------------------------------------------------------------
# module-level wrappers
# ----------------------------------------------------------------------------
def sinusoidal_embedding(t, dim=128, theta=10000):
    half = dim // 2
    f = math.log(theta) / (half - 1)
    freqs = jnp.exp(jnp.arange(half, dtype=jnp.float32) * -f)
    emb = t[:, None].astype(jnp.float32) * freqs[None, :]
    return jnp.concatenate([jnp.sin(emb), jnp.cos(emb)], axis=-1)


def apply_resnet(x, t_emb, p):
    B, H, W, Cin = x.shape
    Cout = p['dim_out']
    # timestep projection: SiLU -> Linear (SiLU fused inside the matmul kernel)
    temb = pallas_linear(t_emb, p['tproj']['w'], p['tproj']['b'], silu_in=True)   # (B, Cout)
    # residual branch
    if p['dim'] != Cout:
        xr = pallas_linear(x.reshape(B * H * W, Cin), p['res']['w'], p['res']['b'])
        xr = xr.reshape(B, H, W, Cout)
    else:
        xr = x
    # block1: GN + SiLU + conv  (+ timestep-embedding add fused into the epilogue)
    h = fused_conv3x3(x, p['c1']['w'], p['c1']['b'], gn=p['n1'], silu=True, add_vec=temb)
    # block2: GN + SiLU + conv  (+ residual add fused into the epilogue)
    h = fused_conv3x3(h, p['c2']['w'], p['c2']['b'], gn=p['n2'], silu=True, add_map=xr)
    return h


# ----------------------------------------------------------------------------
# deterministic parameter initialization (shapes follow the torch module)
# ----------------------------------------------------------------------------
class KeyGen:
    def __init__(self, key):
        self.key = key

    def __call__(self):
        self.key, sub = jax.random.split(self.key)
        return sub


def init_linear(kg, din, dout, bias=True):
    w = (jax.random.normal(kg(), (din, dout), jnp.float32) / math.sqrt(din)).astype(jnp.bfloat16)
    b = jnp.zeros((dout,), jnp.float32) if bias else None
    return {'w': w, 'b': b}


def init_conv(kg, cin, cout, bias=True, pad_out_to=None):
    w = jax.random.normal(kg(), (9, cin, cout), jnp.float32) / math.sqrt(9 * cin)
    if pad_out_to is not None and pad_out_to > cout:
        w = jnp.pad(w, ((0, 0), (0, 0), (0, pad_out_to - cout)))      # lane-dense output
    w = w.astype(jnp.bfloat16)
    b = jnp.zeros((cout,), jnp.float32) if bias else None
    return {'w': w, 'b': b}


def init_gn(c):
    return {'g': jnp.ones((c,), jnp.float32), 'b': jnp.zeros((c,), jnp.float32)}


def init_resnet(kg, dim, dim_out, tdim):
    return {
        'tproj': init_linear(kg, tdim, dim_out),
        'n1': init_gn(dim), 'c1': init_conv(kg, dim, dim_out),
        'n2': init_gn(dim_out), 'c2': init_conv(kg, dim_out, dim_out),
        'res': init_linear(kg, dim, dim_out),
        'dim': dim, 'dim_out': dim_out,
    }


def init_attn(kg, c):
    scale = float(c) ** (-0.5)

    def lin():
        return jax.random.normal(kg(), (c, c), jnp.float32) / math.sqrt(c)

    return {
        'norm': init_gn(c),
        'wq': (lin() * scale).astype(jnp.bfloat16),    # softmax scale folded into Wq
        'wk': lin().astype(jnp.bfloat16),
        'wv': lin().astype(jnp.bfloat16),
        'wp': lin().astype(jnp.bfloat16),
    }


def init_model(seed=0):
    kg = KeyGen(jax.random.PRNGKey(seed))
    ch = [128, 256, 256, 256]
    inc, tdim = 128, 512
    p = {
        'time_l1': init_linear(kg, inc, tdim),
        'time_l2': init_linear(kg, tdim, tdim),
        'init_conv': init_conv(kg, 1, ch[0], bias=False),
    }
    down_cfg = [(inc, ch[0], False, True), (ch[0], ch[1], True, True),
                (ch[1], ch[2], False, True), (ch[2], ch[3], False, False)]
    p['downs'] = []
    for din, dout, use_attn, use_down in down_cfg:
        p['downs'].append({
            'b1': init_resnet(kg, din, dout, tdim),
            'a1': init_attn(kg, dout) if use_attn else None,
            'b2': init_resnet(kg, dout, dout, tdim),
            'a2': init_attn(kg, dout) if use_attn else None,
            'down': init_conv(kg, dout, dout, bias=True) if use_down else None,
        })
    p['mid_b1'] = init_resnet(kg, ch[3], ch[3], tdim)
    p['mid_attn'] = init_attn(kg, ch[3])
    p['mid_b2'] = init_resnet(kg, ch[3], ch[3], tdim)
    up_cfg = [
        (ch[3] + ch[3], ch[3], ch[3] + ch[2], ch[2], False, True),
        (ch[2] + ch[2], ch[2], ch[2] + ch[1], ch[1], False, True),
        (ch[1] + ch[1], ch[1], ch[1] + ch[0], ch[0], True, True),
        (ch[0] + ch[0], ch[0], ch[0] + inc, inc, False, False),
    ]
    p['ups'] = []
    for d12_in, d12_out, d3_in, d3_out, use_attn, use_up in up_cfg:
        p['ups'].append({
            'b1': init_resnet(kg, d12_in, d12_out, tdim),
            'a1': init_attn(kg, d12_out) if use_attn else None,
            'b2': init_resnet(kg, d12_in, d12_out, tdim),
            'a2': init_attn(kg, d12_out) if use_attn else None,
            'b3': init_resnet(kg, d3_in, d3_out, tdim),
            'a3': init_attn(kg, d3_out) if use_attn else None,
            'up': init_conv(kg, d3_out, d3_out, bias=True) if use_up else None,
        })
    p['final_norm'] = init_gn(inc)
    p['final_conv'] = init_conv(kg, inc, 1, bias=False, pad_out_to=128)
    return p


# ----------------------------------------------------------------------------
# full forward pass (mirrors MNistUNet.forward)
# ----------------------------------------------------------------------------
def forward(params, x_nchw, t):
    x = jnp.transpose(x_nchw, (0, 2, 3, 1)).astype(jnp.float32)       # NCHW -> NHWC

    # time_proj: Sinusoidal -> Linear -> SiLU -> Linear
    emb = sinusoidal_embedding(t, 128)
    e = pallas_linear(emb, params['time_l1']['w'], params['time_l1']['b'], silu_out=True)
    t_emb = pallas_linear(e, params['time_l2']['w'], params['time_l2']['b'])

    h = conv3x3_small_cin(x, params['init_conv']['w'], None)
    skips = [h]
    n_downs = len(params['downs'])
    for i, layer in enumerate(params['downs']):
        h = apply_resnet(h, t_emb, layer['b1'])
        if layer['a1'] is not None:
            h = apply_attn(h, layer['a1'])
        skips.append(h)
        h = apply_resnet(h, t_emb, layer['b2'])
        if layer['a2'] is not None:
            h = apply_attn(h, layer['a2'])
        skips.append(h)
        if layer['down'] is not None:
            h = conv3x3_stride2(h, layer['down']['w'], layer['down']['b'])
        if i != n_downs - 1:
            skips.append(h)

    h = apply_resnet(h, t_emb, params['mid_b1'])
    h = apply_attn(h, params['mid_attn'])
    h = apply_resnet(h, t_emb, params['mid_b2'])

    for layer in params['ups']:
        # TODO(synk): conv(concat(a,b)) could be split into conv_a(a)+conv_b(b) to skip the
        # concat materialization; kept explicit because 384-ch GroupNorm groups straddle halves.
        h = apply_resnet(jnp.concatenate([h, skips.pop()], axis=-1), t_emb, layer['b1'])
        if layer['a1'] is not None:
            h = apply_attn(h, layer['a1'])
        h = apply_resnet(jnp.concatenate([h, skips.pop()], axis=-1), t_emb, layer['b2'])
        if layer['a2'] is not None:
            h = apply_attn(h, layer['a2'])
        h = apply_resnet(jnp.concatenate([h, skips.pop()], axis=-1), t_emb, layer['b3'])
        if layer['a3'] is not None:
            h = apply_attn(h, layer['a3'])
        if layer['up'] is not None:
            # TODO(synk): nearest-x2 upsample is still materialized; could be folded into
            # the following conv's tap gather.
            h = jnp.repeat(jnp.repeat(h, 2, axis=1), 2, axis=2)
            h = fused_conv3x3(h, layer['up']['w'], layer['up']['b'])

    # final: GroupNorm + SiLU + conv(128 -> 1), output padded to 128 lanes then sliced
    h = fused_conv3x3(h, params['final_conv']['w'], None,
                      gn=params['final_norm'], silu=True)
    h = h[..., :1]
    return jnp.transpose(h, (0, 3, 1, 2))                              # NHWC -> NCHW


# ----------------------------------------------------------------------------
if __name__ == "__main__":
    params = init_model(seed=0)

    key = jax.random.PRNGKey(0)
    kx, kt = jax.random.split(key)
    B, H, W = 2, 16, 16                     # spatial must be a multiple of 8 for U-Net skips
    x = jax.random.normal(kx, (B, 1, H, W), jnp.float32)
    t = jax.random.uniform(kt, (B,), jnp.float32, minval=0.0, maxval=1000.0)

    out = forward(params, x, t)
    out = jax.block_until_ready(out)

    assert out.shape == (B, 1, H, W), out.shape
    assert bool(jnp.all(jnp.isfinite(out)))
    print("KERNEL_OK")
</pallas_src>

<mosaic_0001>
module attributes {stable_mosaic.version = 11 : i64} {
  func.func @kern(%arg0: i32, %arg1: memref<2x128xf32, #tpu.memory_space<vmem>>, %arg2: memref<128x512xbf16, #tpu.memory_space<vmem>>, %arg3: memref<1x512xf32, #tpu.memory_space<vmem>>, %arg4: memref<2x512xf32, #tpu.memory_space<vmem>>) attributes {dimension_semantics = [#tpu.dimension_semantics<parallel>], iteration_bounds = array<i64: 1>, scalar_prefetch = 0 : i64, scratch_operands = 0 : i64, tpu.core_type = #tpu.core_type<tc>, window_params = [{transform_indices = @transform_0, window_bounds = array<i64: 2, 128>}, {pipeline_mode = #tpu.pipeline_mode<synchronous>, transform_indices = @transform_1, window_bounds = array<i64: 128, 512>}, {pipeline_mode = #tpu.pipeline_mode<synchronous>, transform_indices = @transform_2, window_bounds = array<i64: 1, 512>}, {transform_indices = @transform_3, window_bounds = array<i64: 2, 512>}]} {
    %c0 = arith.constant 0 : index
    %c0_0 = arith.constant 0 : index
    %0 = vector.load %arg1[%c0, %c0_0] : memref<2x128xf32, #tpu.memory_space<vmem>>, vector<2x128xf32>
    %1 = arith.truncf %0 : vector<2x128xf32> to vector<2x128xbf16>
    %c0_1 = arith.constant 0 : index
    %c0_2 = arith.constant 0 : index
    %2 = vector.load %arg2[%c0_1, %c0_2] : memref<128x512xbf16, #tpu.memory_space<vmem>>, vector<128x512xbf16>
    %cst = arith.constant dense<0.000000e+00> : vector<2x512xf32>
    %3 = tpu.matmul %1, %2, %cst {dimension_numbers = #tpu.dot_dimension_numbers<[1], [0], [0], [1], [0, 0, 1, 1], [], []>} : vector<2x128xbf16>, vector<128x512xbf16>, vector<2x512xf32> -> vector<2x512xf32>
    %c0_3 = arith.constant 0 : index
    %c0_4 = arith.constant 0 : index
    %4 = vector.load %arg3[%c0_3, %c0_4] : memref<1x512xf32, #tpu.memory_space<vmem>>, vector<1x512xf32>
    %5 = vector.broadcast %4 : vector<1x512xf32> to vector<2x512xf32>
    %6 = arith.addf %3, %5 : vector<2x512xf32>
    %7 = arith.negf %6 : vector<2x512xf32>
    %8 = math.exp %7 : vector<2x512xf32>
    %cst_5 = arith.constant 1.000000e+00 : f32
    %9 = vector.broadcast %cst_5 : f32 to vector<2x512xf32>
    %10 = arith.addf %9, %8 : vector<2x512xf32>
    %11 = arith.divf %9, %10 : vector<2x512xf32>
    %12 = arith.mulf %6, %11 : vector<2x512xf32>
    %c0_6 = arith.constant 0 : index
    %c0_7 = arith.constant 0 : index
    %13 = vector.load %arg4[%c0_6, %c0_7] : memref<2x512xf32, #tpu.memory_space<vmem>>, vector<2x512xf32>
    tpu.vector_store %arg4[%c0_6, %c0_7], %12 {strides = array<i32>} : memref<2x512xf32, #tpu.memory_space<vmem>>, vector<2x512xf32>,
    return
  }
  func.func @transform_0(%arg0: i32) -> (i32, i32) {
    %c0_i32 = arith.constant 0 : i32
    %c0_i32_0 = arith.constant 0 : i32
    return %arg0, %c0_i32 : i32, i32
  }
  func.func @transform_1(%arg0: i32) -> (i32, i32) {
    %c0_i32 = arith.constant 0 : i32
    %c0_i32_0 = arith.constant 0 : i32
    %c0_i32_1 = arith.constant 0 : i32
    return %c0_i32, %c0_i32_0 : i32, i32
  }
  func.func @transform_2(%arg0: i32) -> (i32, i32) {
    %c0_i32 = arith.constant 0 : i32
    %c0_i32_0 = arith.constant 0 : i32
    %c0_i32_1 = arith.constant 0 : i32
    return %c0_i32, %c0_i32_0 : i32, i32
  }
  func.func @transform_3(%arg0: i32) -> (i32, i32) {
    %c0_i32 = arith.constant 0 : i32
    %c0_i32_0 = arith.constant 0 : i32
    return %arg0, %c0_i32 : i32, i32
  }
}

</mosaic_0001>

<bundles_post_ra>
// kernel: tpu_custom_call.1
= control target key start
LH: loop header
LB: loop body
LE: loop exit
PB: predicated region body
PF: predicated region fallthrough
CT: control target
= control target key end

     0   :  { %8 = vsyncpa [#allocation3], 0  ;;  %s652_s0 = inlined_call_operand.hbm [shape: f32[2,128], index: 0, kind: input, shape index: {}]   ;;  %s653_s1 = inlined_call_operand.hbm [shape: bf16[128,512], index: 1, kind: input, shape index: {}]   ;;  %s654_s2 = inlined_call_operand.hbm [shape: f32[1,512], index: 2, kind: input, shape index: {}]   ;;  %s655_s3 = inlined_call_operand.hbm [shape: f32[2,512], index: 3, kind: output, shape index: {}]  }
   0x1   :  { %9 = vsyncpa [#allocation6], 0 }
   0x2   :  { %10 = vsyncpa [#allocation4], 0  ;;  %s612_s12 = smov [#allocation5]  }
   0x3   :  { %s26_s13 = sshll.u32 %s612_s12, 4  ;;  %s27_s13 = int_to_ptr.vmem [resolvable:$true] %s26_s13 }
   0x4   :  { %s534_s14 = scalar_lea.vmem %s27_s13, 4096  ;;  %p539_p1 = scmp.lt.s32.totalorder %s27_s13, %s27_s13 }
   0x5   :  { %p535_p0 = scmp.ne.s32.totalorder %s27_s13, %s534_s14  ;;  %p540_p2 = scmp.lt.s32.totalorder %s534_s14, %s534_s14 }
   0x7   :  { %p541_p3 = por %p540_p2, %p539_p1 }
   0x9   :  { %p542_p4 = pnand %p541_p3, %p535_p0 }
   0xb   :  { %545 = shalt.err (!%p542_p4)
}
   0xc   :  { %s613_s15 = smov 256   ;;  %s614_s16 = smov 16  }
   0xd   :  { %32 = dma.hbm_to_vmem [thread:$0]  %s653_s1, 4096, %s27_s13, [#allocation6], %s613_s15, %s613_s15, %s614_s16  }
   0xe   :  { %s615_s19 = smov [#allocation2]   ;;  %s616_s21 = smov [#allocation7]  }
   0xf   :  { %s17_s20 = sshll.u32 %s615_s19, 4  ;;  %s39_s22 = sshll.u32 %s616_s21, 4  ;;  %s18_s20 = int_to_ptr.vmem [resolvable:$true] %s17_s20  ;;  %s40_s22 = int_to_ptr.vmem [resolvable:$true] %s39_s22 }
  0x10   :  { %s554_s23 = scalar_lea.vmem %s18_s20, 32  ;;  %p559_p6 = scmp.lt.s32.totalorder %s18_s20, %s18_s20 }
  0x11   :  { %p555_p5 = scmp.ne.s32.totalorder %s18_s20, %s554_s23  ;;  %p560_p7 = scmp.lt.s32.totalorder %s554_s23, %s554_s23 }
  0x13   :  { %p561_p8 = por %p560_p7, %p559_p6 }
  0x15   :  { %p562_p9 = pnand %p561_p8, %p555_p5 }
  0x17   :  { %565 = shalt.err (!%p562_p9)
}
  0x18   :  { %20 = dma.hbm_to_vmem [thread:$0]  %s652_s0, 32, %s18_s20, [#allocation3]  }
  0x19   :  { %s574_s26 = scalar_lea.vmem %s40_s22, 64  ;;  %p579_p11 = scmp.lt.s32.totalorder %s40_s22, %s40_s22 }
  0x1a   :  { %p575_p10 = scmp.ne.s32.totalorder %s40_s22, %s574_s26  ;;  %p580_p12 = scmp.lt.s32.totalorder %s574_s26, %s574_s26 }
  0x1c   :  { %p581_p13 = por %p580_p12, %p579_p11 }
  0x1e   :  { %p582_p0 = pnand %p581_p13, %p575_p10 }
  0x20   :  { %585 = shalt.err (!%p582_p0)
}
  0x21   :  { %42 = dma.hbm_to_vmem [thread:$0]  %s654_s2, 64, %s40_s22, [#allocation6]  }
  0x22   :  { %606 = dma.done.wait [#allocation3], 32  }
  0x23   :  { %607 = vsyncadd [#allocation3], 4294967264 }
  0x24   :  { %608 = dma.done.wait [#allocation6], 4160  }
  0x25   :  { %609 = vsyncadd [#allocation6], 4294963136  ;;  %v617_v0 = vmov 0   ;;  %v462_v1 = vld [vmem:[#allocation5 + $0xe4] ss:$16 sps:$4 sm:$0xff]   ;;  %v89_v35 = vlaneseq  ;;  %s619_s0 = smov [#allocation8]  }
  0x26   :  { %301 = vmatprep.mubr.bf16.mxu0 %v617_v0  ;;  %342 = vmatprep.mubr.bf16.mxu1 %v617_v0  ;;  %v464_v2 = vld [vmem:[#allocation5 + $0xec] ss:$16 sps:$4 sm:$0xff]   ;;  %v466_v3 = vld [vmem:[#allocation5 + $0xe0] ss:$16 sps:$4 sm:$0xff]   ;;  %v467_v4 = vld [vmem:[#allocation5 + $0xe8] ss:$16 sps:$4 sm:$0xff]  }
  0x27   :  { %269 = vmatprep.subr.bf16.mxu0 %v462_v1  ;;  %310 = vmatprep.subr.bf16.mxu1 %v464_v2  ;;  %v468_v5 = vld [vmem:[#allocation5 + $0xc4] ss:$16 sps:$4 sm:$0xff]   ;;  %v470_v6 = vld [vmem:[#allocation5 + $0xcc] ss:$16 sps:$4 sm:$0xff]   ;;  %v472_v7 = vld [vmem:[#allocation5 + $0xc0] ss:$16 sps:$4 sm:$0xff]  }
  0x28   :  { %270 = vmatpush1.bf16.msra.mxu0 %v466_v3  ;;  %311 = vmatpush1.bf16.msra.mxu1 %v467_v4  ;;  %v473_v8 = vld [vmem:[#allocation5 + $0xc8] ss:$16 sps:$4 sm:$0xff]   ;;  %v474_v9 = vld [vmem:[#allocation5 + $0xa4] ss:$16 sps:$4 sm:$0xff]   ;;  %v476_v10 = vld [vmem:[#allocation5 + $0xac] ss:$16 sps:$4 sm:$0xff]  }
  0x29   :  { %271 = vmatprep.subr.bf16.mxu0 %v468_v5  ;;  %312 = vmatprep.subr.bf16.mxu1 %v470_v6  ;;  %v478_v11 = vld [vmem:[#allocation5 + $0xa0] ss:$16 sps:$4 sm:$0xff]   ;;  %v479_v12 = vld [vmem:[#allocation5 + $0xa8] ss:$16 sps:$4 sm:$0xff]   ;;  %v480_v13 = vld [vmem:[#allocation5 + $0x84] ss:$16 sps:$4 sm:$0xff]  }
  0x2a   :  { %v482_v14 = vld [vmem:[#allocation5 + $0x8c] ss:$16 sps:$4 sm:$0xff]   ;;  %v484_v15 = vld [vmem:[#allocation5 + $0x80] ss:$16 sps:$4 sm:$0xff]   ;;  %v485_v16 = vld [vmem:[#allocation5 + $0x88] ss:$16 sps:$4 sm:$0xff]  }
  0x2b   :  { %v486_v17 = vld [vmem:[#allocation5 + $0x64] ss:$16 sps:$4 sm:$0xff]   ;;  %v488_v18 = vld [vmem:[#allocation5 + $0x6c] ss:$16 sps:$4 sm:$0xff]   ;;  %v490_v19 = vld [vmem:[#allocation5 + $0x60] ss:$16 sps:$4 sm:$0xff]  }
  0x2c   :  { %272 = vmatpush1.bf16.msra.mxu0 %v472_v7  ;;  %313 = vmatpush1.bf16.msra.mxu1 %v473_v8  ;;  %v491_v20 = vld [vmem:[#allocation5 + $0x68] ss:$16 sps:$4 sm:$0xff]   ;;  %v492_v21 = vld [vmem:[#allocation5 + $0x44] ss:$16 sps:$4 sm:$0xff]   ;;  %v494_v22 = vld [vmem:[#allocation5 + $0x4c] ss:$16 sps:$4 sm:$0xff]  }
  0x2d   :  { %273 = vmatprep.subr.bf16.mxu0 %v474_v9  ;;  %314 = vmatprep.subr.bf16.mxu1 %v476_v10  ;;  %v496_v23 = vld [vmem:[#allocation5 + $0x40] ss:$16 sps:$4 sm:$0xff]   ;;  %v497_v24 = vld [vmem:[#allocation5 + $0x48] ss:$16 sps:$4 sm:$0xff]   ;;  %v498_v25 = vld [vmem:[#allocation5 + $0x24] ss:$16 sps:$4 sm:$0xff]  }
  0x2e   :  { %v500_v26 = vld [vmem:[#allocation5 + $0x2c] ss:$16 sps:$4 sm:$0xff]   ;;  %v502_v27 = vld [vmem:[#allocation5 + $0x20] ss:$16 sps:$4 sm:$0xff]   ;;  %v503_v28 = vld [vmem:[#allocation5 + $0x28] ss:$16 sps:$4 sm:$0xff]  }
  0x2f   :  { %v504_v29 = vld [vmem:[#allocation5 + $0x4] ss:$16 sps:$4 sm:$0xff]   ;;  %v506_v30 = vld [vmem:[#allocation5 + $0xc] ss:$16 sps:$4 sm:$0xff]   ;;  %v508_v31 = vld [vmem:[#allocation5] ss:$16 sps:$4 sm:$0xff]  }
  0x30   :  { %274 = vmatpush1.bf16.msra.mxu0 %v478_v11  ;;  %315 = vmatpush1.bf16.msra.mxu1 %v479_v12  ;;  %v509_v32 = vld [vmem:[#allocation5 + $0x8] ss:$16 sps:$4 sm:$0xff]   ;;  %v53_v33 = vld [vmem:[#allocation2] sm:$0x3]  ;;  %v90_v36 = vshrl.u32 %v89_v35, 7  ;;  %s408_s2 = sshll.u32 %s619_s0, 4  ;;  %s409_s2 = int_to_ptr.vmem [resolvable:$true] %s408_s2 }
  0x31   :  { %275 = vmatprep.subr.bf16.mxu0 %v480_v13  ;;  %316 = vmatprep.subr.bf16.mxu1 %v482_v14  ;;  %v54_v34 = vpack.c.bf16 %v53_v33, %v53_v33  ;;  %v87_v39 = vld [vmem:[#allocation7] sm:$0xf]  ;;  %v618_v6 = vmov 1983009808   ;;  %s586_s28 = scalar_lea.vmem %s409_s2, 128  ;;  %p591_p2 = scmp.lt.s32.totalorder %s409_s2, %s409_s2 }
  0x32   :  { %v91_v37 = vsub.s32 0, %v90_v36  ;;  %v99_v38 = vsub.s32 2, %v90_v36  ;;  %v95_v40 = vsub.s32 1, %v90_v36  ;;  %v103_v41 = vsub.s32 3, %v90_v36  ;;  %p587_p1 = scmp.ne.s32.totalorder %s409_s2, %s586_s28  ;;  %p592_p3 = scmp.lt.s32.totalorder %s586_s28, %s586_s28 }
  0x33   :  { %v386_v7 = vunpack.c.l.s4 %v618_v6 }
  0x34   :  { %276 = vmatpush1.bf16.msra.mxu0 %v484_v15  ;;  %317 = vmatpush1.bf16.msra.mxu1 %v485_v16  ;;  %v92_v42 = vrot.slane %v87_v39, %v91_v37  ;;  %v100_v43 = vrot.slane %v87_v39, %v99_v38  ;;  %v96_v44 = vrot.slane %v87_v39, %v95_v40  ;;  %p593_p4 = por %p592_p3, %p591_p2 }
  0x35   :  { %277 = vmatprep.subr.bf16.mxu0 %v486_v17  ;;  %318 = vmatprep.subr.bf16.mxu1 %v488_v18  ;;  %v104_v45 = vrot.slane %v87_v39, %v103_v41  ;;  %v387_v8 = vunpack.c.0.s8 %v386_v7 }
  0x36   :  { %p594_p5 = pnand %p593_p4, %p587_p1 }
  0x37   :  { %v390_v15 = vsub.s32 %v387_v8, %v90_v36 }
  0x38   :  { %278 = vmatpush1.bf16.msra.mxu0 %v490_v19  ;;  %319 = vmatpush1.bf16.msra.mxu1 %v491_v20 }
  0x39   :  { %279 = vmatprep.subr.bf16.mxu0 %v492_v21  ;;  %320 = vmatprep.subr.bf16.mxu1 %v494_v22 }
  0x3c   :  { %280 = vmatpush1.bf16.msra.mxu0 %v496_v23  ;;  %321 = vmatpush1.bf16.msra.mxu1 %v497_v24 }
  0x3d   :  { %281 = vmatprep.subr.bf16.mxu0 %v498_v25  ;;  %322 = vmatprep.subr.bf16.mxu1 %v500_v26 }
  0x40   :  { %282 = vmatpush1.bf16.msra.mxu0 %v502_v27  ;;  %323 = vmatpush1.bf16.msra.mxu1 %v503_v28 }
  0x41   :  { %283 = vmatprep.subr.bf16.mxu0 %v504_v29  ;;  %324 = vmatprep.subr.bf16.mxu1 %v506_v30 }
  0x44   :  { %284 = vmatpush1.bf16.msra.mxu0 %v508_v31  ;;  %325 = vmatpush1.bf16.msra.mxu1 %v509_v32 }
  0x47   :  { %302 = vmatmul.mubr.bf16.vlgmr.msra.gmra.mxu0 %v54_v34  ;;  %343 = vmatmul.mubr.bf16.vlgmr.msra.gmra.mxu1 %v54_v34 }
 0x107   :  { %v303_v46 = vpop.f32.mrf.mxu0  ;;  %v344_v47 = vpop.f32.mrf.mxu1 }
 0x108   :  { %v304_v48 = vadd.f32 %v303_v46, %v92_v42  ;;  %v345_v49 = vadd.f32 %v344_v47, %v100_v43 }
 0x109   :  { %v305_v50 = vpop.f32.mrf.mxu0  ;;  %v346_v51 = vpop.f32.mrf.mxu1 }
 0x10a   :  { %v450_v52 = vmul.f32 -1.442695, %v304_v48  ;;  %v452_v53 = vmul.f32 -1.442695, %v345_v49  ;;  %v306_v54 = vadd.f32 %v305_v50, %v96_v44  ;;  %v347_v55 = vadd.f32 %v346_v51, %v104_v45 }
 0x10b   :  { %v307_v56 = vpop.f32.mrf.mxu0  ;;  %v348_v57 = vpop.f32.mrf.mxu1 }
 0x10c   :  { %510 = vpow2.f32 %v450_v52  ;;  %v451_v58 = vmul.f32 -1.442695, %v306_v54  ;;  %v453_v59 = vmul.f32 -1.442695, %v347_v55 }
 0x10d   :  { %512 = vpow2.f32 %v452_v53  ;;  %v308_v60 = vpop.f32.mrf.mxu0  ;;  %v349_v61 = vpop.f32.mrf.mxu1 }
 0x10e   :  { %514 = vpow2.f32 %v451_v58 }
 0x10f   :  { %516 = vpow2.f32 %v453_v59 }
 0x119   :  { %v511_v62 = vpop.eup %510 }
 0x11a   :  { %v513_v63 = vpop.eup %512  ;;  %v363_v0 = vadd.f32 1.0, %v511_v62 }
 0x11b   :  { %v515_v1 = vpop.eup %514  ;;  %v365_v2 = vadd.f32 1.0, %v513_v63 }
 0x11c   :  { %v517_v3 = vpop.eup %516  ;;  %518 = vrcp.f32 %v363_v0  ;;  %v364_v4 = vadd.f32 1.0, %v515_v1 }
 0x11d   :  { %520 = vrcp.f32 %v365_v2  ;;  %v366_v5 = vadd.f32 1.0, %v517_v3 }
 0x11e   :  { %522 = vrcp.f32 %v364_v4 }
 0x11f   :  { %524 = vrcp.f32 %v366_v5 }
 0x129   :  { %v519_v9 = vpop.eup %518 }
 0x12a   :  { %v521_v10 = vpop.eup %520  ;;  %v375_v13 = vmul.f32 %v519_v9, %v304_v48 }
 0x12b   :  { %v523_v11 = vpop.eup %522  ;;  %v377_v16 = vmul.f32 %v521_v10, %v345_v49 }
 0x12c   :  { %v525_v12 = vpop.eup %524  ;;  %v376_v14 = vmul.f32 %v523_v11, %v306_v54 }
 0x12d   :  { %v378_v17 = vmul.f32 %v525_v12, %v347_v55 }
 0x12e   :  { %v383_v18 = vcombine.low %v375_v13, %v376_v14 }
 0x12f   :  { %v384_v19 = vcombine.low %v377_v16, %v378_v17 }
 0x130   :  { %v391_v20 = vrot.slane %v383_v18, %v390_v15 }
 0x131   :  { %v398_v21 = vrot.slane %v384_v19, %v390_v15 }
 0x133   :  { %v399_v22 = vcombine.low %v391_v20, %v398_v21 }
 0x135   :  { %401 = vst [vmem:[#allocation8] sm:$0xff] %v399_v22 }
 0x136   :  { %597 = shalt.err (!%p594_p5)
}
 0x137   :  { %411 = dma.vmem_to_hbm [thread:$0]  %s409_s2, 128, %s655_s3, [#allocation4]  }
 0x138   :  { %610 = dma.done.wait [#allocation4], 128  }
 0x139   :  { %611 = vsyncadd [#allocation4], 4294967168 }
 0x13a   :  { %415 = vsyncpa [#allocation3], 1 }
 0x13b   :  { %416 = vsyncpa [#allocation6], 1 }
 0x13c   :  { %417 = vsyncpa [#allocation4], 1 }

</bundles_post_ra>
